<compile_context>
chip_gen: v7x
topology: tpu7x:2x2x1
jax: 0.10.0
libtpu: 0.0.40
codegen_flags: <defaults>
</compile_context>

<pallas_src>
import functools

import jax
import jax.numpy as jnp
from jax.experimental import pallas as pl
from jax.experimental.pallas import tpu as pltpu

K = 3  # kernel_size = stride = 3 (MaxPool2d default: stride = kernel_size)


def _cdiv(a, b):
    return -(-a // b)


def _maxpool_kernel(x_ref, o_ref, xp_ref, *, h, fill, need_h_mask):
    """One (hb, W, ncb) input block -> one (th, ow, ncb) output block.

    Layout: lanes = channels (ncb), sublanes = W, leading dim = H, so both
    pooling reductions are sublane/leading-axis maximums (VPU work, no
    relayouts), and every store is lane-dense in the channel axis.
    """
    hb, w, ncb = x_ref.shape           # input block rows (hb = min(th*K, h))
    hk, wp, _ = xp_ref.shape           # padded scratch: (th*K, ow*K, ncb)
    th, ow, _ = o_ref.shape            # output block

    x = x_ref[...]

    # Ragged H tail: the last H block may read past the end of the image
    # (unspecified data) -> mask those rows to the fill value in registers.
    if need_h_mask:
        row0 = pl.program_id(0) * hb
        rows = jax.lax.broadcasted_iota(jnp.int32, x.shape, 0) + row0
        x = jnp.where(rows < h, x, jnp.array(fill, x.dtype))

    # Stage into the ceil-mode-padded scratch (padding lives only in VMEM,
    # never in HBM — no padded copy of the input is ever materialized).
    xp_ref[:hb, :w, :] = x
    if wp > w:                                   # ragged W tail (static)
        xp_ref[:, w:, :] = jnp.full((hk, wp - w, ncb), fill, x.dtype)
    if hk > hb:                                  # only when h < K (static)
        xp_ref[hb:, :w, :] = jnp.full((hk - hb, w, ncb), fill, x.dtype)

    # Max over the 3 window columns: sublane-strided slices of the scratch ref.
    cols = xp_ref[:, pl.ds(0, ow, stride=K), :]
    cols = jnp.maximum(cols, xp_ref[:, pl.ds(1, ow, stride=K), :])
    cols = jnp.maximum(cols, xp_ref[:, pl.ds(2, ow, stride=K), :])   # (hk, ow, ncb)

    # Max over the 3 window rows: split the *leading* axis only (layout-free
    # reshape — lanes/sublanes untouched) and take a maximum tree.
    cols = cols.reshape(th, K, ow, ncb)
    o_ref[...] = jnp.maximum(jnp.maximum(cols[:, 0], cols[:, 1]), cols[:, 2])


@functools.partial(
    jax.jit, static_argnames=("out_row_tile", "channel_tile", "vmem_limit_bytes")
)
def maxpool2d_k3_ceil(x, *, out_row_tile=None, channel_tile=None,
                      vmem_limit_bytes=32 * 1024 * 1024):
    """MaxPool2d(kernel_size=3, stride=3, ceil_mode=True) over an NCHW input."""
    n, ch, h, w = x.shape
    nc = n * ch
    oh = _cdiv(h, K)       # == ceil((h - K)/K) + 1 when stride == K (ceil_mode)
    ow = _cdiv(w, K)
    wp = ow * K

    if jnp.issubdtype(x.dtype, jnp.floating):
        fill = float("-inf")
    else:
        fill = int(jnp.iinfo(x.dtype).min)

    # ---- tile sizing -------------------------------------------------------
    # Lanes carry channels: 128 lanes when available, else the full N*C.
    ncb = channel_tile or (128 if nc >= 128 else nc)
    # `th` pooled output rows per block; keep each input block around ~2 MiB so
    # the double-buffered pipeline fits on v7x (64 MiB VMEM) as well as
    # v5e/v6e defaults, and the grid keeps >= 2 steps for megacore sharding.
    itemsize = jnp.dtype(x.dtype).itemsize
    row_bytes = K * w * ncb * itemsize            # input bytes per output row
    budget = 2 * 1024 * 1024
    max_th = max(1, h // K)                       # block rows never exceed H
    th = out_row_tile or max(1, min(oh, max_th, budget // max(row_bytes, 1)))
    hb = min(th * K, h)                           # input block rows
    grid_h = _cdiv(oh, th)
    grid_c = _cdiv(nc, ncb)
    need_h_mask = grid_h * hb > h                 # last H block is ragged

    # Layout plumbing (prescribed by the lane-dense-output feedback): present
    # the data as (H, W, N*C) so channels sit on the 128-wide lane axis.
    xt = jnp.transpose(x, (2, 3, 0, 1)).reshape(h, w, nc)

    kernel = functools.partial(
        _maxpool_kernel, h=h, fill=fill, need_h_mask=need_h_mask
    )
    out_t = pl.pallas_call(
        kernel,
        out_shape=jax.ShapeDtypeStruct((oh, ow, nc), x.dtype),
        grid_spec=pltpu.PrefetchScalarGridSpec(
            num_scalar_prefetch=0,
            grid=(grid_h, grid_c),
            in_specs=[pl.BlockSpec((hb, w, ncb), lambda i, j: (i, 0, j))],
            out_specs=pl.BlockSpec((th, ow, ncb), lambda i, j: (i, 0, j)),
            scratch_shapes=[pltpu.VMEM((th * K, wp, ncb), x.dtype)],
        ),
        compiler_params=pltpu.CompilerParams(
            dimension_semantics=("parallel", "parallel"),
            vmem_limit_bytes=vmem_limit_bytes,
        ),
    )(xt)

    return jnp.transpose(out_t.reshape(oh, ow, n, ch), (2, 3, 0, 1))


def _reference(x):
    # lax.reduce_window with the same ceil-mode padding PyTorch MaxPool2d uses.
    _, _, h, w = x.shape
    oh, ow = _cdiv(h, K), _cdiv(w, K)
    return jax.lax.reduce_window(
        x, -jnp.inf, jax.lax.max,
        window_dimensions=(1, 1, K, K),
        window_strides=(1, 1, K, K),
        padding=((0, 0), (0, 0), (0, oh * K - h), (0, ow * K - w)),
    )


if __name__ == "__main__":
    key = jax.random.PRNGKey(0)
    k1, k2 = jax.random.split(key)

    # Shape consistent with the module's NCHW conv-style input.
    x = jax.random.normal(k1, (2, 4, 16, 16), dtype=jnp.float32)
    y = maxpool2d_k3_ceil(x)
    jax.block_until_ready(y)
    assert y.shape == (2, 4, 6, 6), y.shape
    assert bool(jnp.array_equal(y, _reference(x))), "mismatch vs reference max-pool"

    # Channel-heavy case: exercises 128-lane channel tiling and ragged H/W tails.
    x2 = jax.random.normal(k2, (1, 256, 10, 11), dtype=jnp.float32)
    y2 = maxpool2d_k3_ceil(x2)
    jax.block_until_ready(y2)
    assert y2.shape == (1, 256, 4, 4), y2.shape
    assert bool(jnp.array_equal(y2, _reference(x2))), "mismatch vs reference (cfg2)"

    print("KERNEL_OK")
</pallas_src>

<mosaic_0001>
module attributes {stable_mosaic.version = 11 : i64} {
  func.func @_maxpool_kernel(%arg0: i32, %arg1: i32, %arg2: memref<15x16x8xf32, #tpu.memory_space<vmem>>, %arg3: memref<5x6x8xf32, #tpu.memory_space<vmem>>, %arg4: memref<15x18x8xf32, #tpu.memory_space<vmem>>) attributes {dimension_semantics = [#tpu.dimension_semantics<parallel>, #tpu.dimension_semantics<parallel>], iteration_bounds = array<i64: 2, 1>, scalar_prefetch = 0 : i64, scratch_operands = 1 : i64, tpu.core_type = #tpu.core_type<tc>, window_params = [{transform_indices = @transform_0, window_bounds = array<i64: 15, 16, 8>}, {transform_indices = @transform_1, window_bounds = array<i64: 5, 6, 8>}]} {
    %c0 = arith.constant 0 : index
    %c0_0 = arith.constant 0 : index
    %c0_1 = arith.constant 0 : index
    %0 = vector.load %arg2[%c0, %c0_0, %c0_1] : memref<15x16x8xf32, #tpu.memory_space<vmem>>, vector<15x16x8xf32>
    %c15_i32 = arith.constant 15 : i32
    %1 = arith.muli %arg0, %c15_i32 : i32
    %2 = tpu.iota {dimensions = array<i32: 0>} : vector<15x16x8xi32>
    %3 = vector.broadcast %1 : i32 to vector<15x16x8xi32>
    %4 = arith.addi %2, %3 : vector<15x16x8xi32>
    %c16_i32 = arith.constant 16 : i32
    %5 = vector.broadcast %c16_i32 : i32 to vector<15x16x8xi32>
    %6 = arith.cmpi slt, %4, %5 : vector<15x16x8xi32>
    %cst = arith.constant 0xFF800000 : f32
    %7 = vector.broadcast %cst : f32 to vector<15x16x8xf32>
    %8 = arith.select %6, %0, %7 : vector<15x16x8xi1>, vector<15x16x8xf32>
    %c0_2 = arith.constant 0 : index
    %c0_3 = arith.constant 0 : index
    %c0_4 = arith.constant 0 : index
    %9 = vector.load %arg4[%c0_2, %c0_3, %c0_4] : memref<15x18x8xf32, #tpu.memory_space<vmem>>, vector<15x16x8xf32>
    tpu.vector_store %arg4[%c0_2, %c0_3, %c0_4], %8 {strides = array<i32>} : memref<15x18x8xf32, #tpu.memory_space<vmem>>, vector<15x16x8xf32>,
    %cst_5 = arith.constant 0xFF800000 : f32
    %10 = vector.broadcast %cst_5 : f32 to vector<15x2x8xf32>
    %c0_6 = arith.constant 0 : index
    %c16 = arith.constant 16 : index
    %c0_7 = arith.constant 0 : index
    %11 = vector.load %arg4[%c0_6, %c16, %c0_7] : memref<15x18x8xf32, #tpu.memory_space<vmem>>, vector<15x2x8xf32>
    tpu.vector_store %arg4[%c0_6, %c16, %c0_7], %10 {strides = array<i32>} : memref<15x18x8xf32, #tpu.memory_space<vmem>>, vector<15x2x8xf32>,
    %c0_8 = arith.constant 0 : index
    %c0_9 = arith.constant 0 : index
    %c0_10 = arith.constant 0 : index
    %12 = tpu.strided_load %arg4[%c0_8, %c0_9, %c0_10] {strides = array<i32: 1, 3, 1>} : memref<15x18x8xf32, #tpu.memory_space<vmem>>, vector<15x6x8xf32>
    %c0_11 = arith.constant 0 : index
    %c1 = arith.constant 1 : index
    %c0_12 = arith.constant 0 : index
    %13 = tpu.strided_load %arg4[%c0_11, %c1, %c0_12] {strides = array<i32: 1, 3, 1>} : memref<15x18x8xf32, #tpu.memory_space<vmem>>, vector<15x6x8xf32>
    %14 = arith.maximumf %12, %13 : vector<15x6x8xf32>
    %c0_13 = arith.constant 0 : index
    %c2 = arith.constant 2 : index
    %c0_14 = arith.constant 0 : index
    %15 = tpu.strided_load %arg4[%c0_13, %c2, %c0_14] {strides = array<i32: 1, 3, 1>} : memref<15x18x8xf32, #tpu.memory_space<vmem>>, vector<15x6x8xf32>
    %16 = arith.maximumf %14, %15 : vector<15x6x8xf32>
    %17 = vector.shape_cast %16 : vector<15x6x8xf32> to vector<5x3x6x8xf32>
    %18 = vector.extract_strided_slice %17 {offsets = [0, 0, 0, 0], sizes = [5, 1, 6, 8], strides = [1, 1, 1, 1]} : vector<5x3x6x8xf32> to vector<5x1x6x8xf32>
    %19 = vector.shape_cast %18 : vector<5x1x6x8xf32> to vector<5x6x8xf32>
    %20 = vector.extract_strided_slice %17 {offsets = [0, 1, 0, 0], sizes = [5, 1, 6, 8], strides = [1, 1, 1, 1]} : vector<5x3x6x8xf32> to vector<5x1x6x8xf32>
    %21 = vector.shape_cast %20 : vector<5x1x6x8xf32> to vector<5x6x8xf32>
    %22 = arith.maximumf %19, %21 : vector<5x6x8xf32>
    %23 = vector.extract_strided_slice %17 {offsets = [0, 2, 0, 0], sizes = [5, 1, 6, 8], strides = [1, 1, 1, 1]} : vector<5x3x6x8xf32> to vector<5x1x6x8xf32>
    %24 = vector.shape_cast %23 : vector<5x1x6x8xf32> to vector<5x6x8xf32>
    %25 = arith.maximumf %22, %24 : vector<5x6x8xf32>
    %c0_15 = arith.constant 0 : index
    %c0_16 = arith.constant 0 : index
    %c0_17 = arith.constant 0 : index
    %26 = vector.load %arg3[%c0_15, %c0_16, %c0_17] : memref<5x6x8xf32, #tpu.memory_space<vmem>>, vector<5x6x8xf32>
    tpu.vector_store %arg3[%c0_15, %c0_16, %c0_17], %25 {strides = array<i32>} : memref<5x6x8xf32, #tpu.memory_space<vmem>>, vector<5x6x8xf32>,
    return
  }
  func.func @transform_0(%arg0: i32, %arg1: i32) -> (i32, i32, i32) {
    %c0_i32 = arith.constant 0 : i32
    %c0_i32_0 = arith.constant 0 : i32
    return %arg0, %c0_i32, %arg1 : i32, i32, i32
  }
  func.func @transform_1(%arg0: i32, %arg1: i32) -> (i32, i32, i32) {
    %c0_i32 = arith.constant 0 : i32
    %c0_i32_0 = arith.constant 0 : i32
    return %arg0, %c0_i32, %arg1 : i32, i32, i32
  }
}

</mosaic_0001>

<bundles_post_ra>
// kernel: maxpool2d_k3_ceil.1
= control target key start
LH: loop header
LB: loop body
LE: loop exit
PB: predicated region body
PF: predicated region fallthrough
CT: control target
= control target key end

     0   :  { %s941_s6 = smov 0   ;;  %s943_s7 = smov 0   ;;  %s1188_s0 = inlined_call_operand.vmem [shape: f32[16,16,8], index: 0, kind: input, shape index: {}]   ;;  %s1189_s1 = inlined_call_operand.vmem [shape: f32[6,6,8], index: 1, kind: output, shape index: {}]  }
   0x1   :  { %s945_s8 = smov 0   ;;  %s947_s9 = smov 0  }
   0x2   :  { %s949_s10 = smov 0  }
   0x3 LB: > { %s694_s11 = sadd.s32 4294967295, %s896_s10   ;;  %s23_s12 = sadd.s32 1, %s892_s9  ;;  %s896_s10 = sphi %s949_s10, %s11_s10   ;;  %s892_s9 = sphi %s947_s9, %s1197_s9   ;;  %s888_s8 = sphi %s945_s8, %s1196_s8   ;;  %s884_s7 = sphi %s943_s7, %s1195_s7   ;;  %s880_s6 = sphi %s941_s6, %s1194_s6  }
   0x4   : > { %p25_p0 = scmp.ge.s32.totalorder %s23_s12, 2  ;;  %s60_s13 = sadd.s32 1, %s884_s7 }
   0x5   : > { %p70_p1 = scmp.ne.s32.totalorder %s884_s7, %s880_s6  ;;  %p71_p2 = scmp.eq.s32.totalorder %s694_s11, 1 }
   0x6   : > { %s1199_s12 = smov (%p25_p0, %s23_s12), 0  ;;  %p698_p4 = scmp.ge.s32.totalorder %s896_s10, 1 }
   0x7   : > { %p973_p3 = por %p71_p2, %p70_p1  ;;  %s55_s15 = ssub.s32 %s892_s9, %s1199_s12 }
   0x8   : > { %p118_p5 = scmp.lt.s32.totalorder %s896_s10, 3  ;;  %p58_p6 = scmp.eq.s32.totalorder %s55_s15, 0 }
   0xa   : > { %p119_p7 = pnand %p698_p4, %p118_p5 }
   0xb   : > { %s982_s16 = scalar_select %p58_p6, %s884_s7, %s60_s13  }
   0xc   : > { %122 = sbr.rel (%p119_p7) target bundleno = 133 (0x85), region = 24  ;;  %vm293_vm0 = vcmask (!%p119_p7), 58368   ;;  %s143_s18 = sand.u32 (!%p119_p7), 1, %s880_s6   ;;  %v930_v0 = vmov (!%p119_p7), -inf   ;;  %vm262_vm1 = vcmask (!%p119_p7), 64512  }
   0xd   : > { %s146_s17 = smul.u32 (!%p119_p7), 15, %s888_s8  ;;  %294 = vst.msk [vmem:[#allocation2 + $0x10] sm:$0x3] (!%p119_p7), %vm293_vm0, %v930_v0  ;;  %295 = vst.msk [vmem:[#allocation2 + $0x28] sm:$0x3] (!%p119_p7), %vm293_vm0, %v930_v0 }
   0xe   : > { %296 = vst.msk [vmem:[#allocation2 + $0x40] sm:$0x3] (!%p119_p7), %vm293_vm0, %v930_v0  ;;  %297 = vst.msk [vmem:[#allocation2 + $0x58] sm:$0x3] (!%p119_p7), %vm293_vm0, %v930_v0  ;;  %s1001_s19 = smul.u32 (!%p119_p7), 40, %s143_s18 }
   0xf   : > { %298 = vst.msk [vmem:[#allocation2 + $0x70] sm:$0x3] (!%p119_p7), %vm293_vm0, %v930_v0  ;;  %299 = vst.msk [vmem:[#allocation2 + $0x88] sm:$0x3] (!%p119_p7), %vm293_vm0, %v930_v0  ;;  %p152_p8 = scmp.lt.s32.totalorder (!%p119_p7), %s146_s17, 15  ;;  %v202_v1 = vstv (!%p119_p7), %s146_s17 }
  0x10   : > { %300 = vst.msk [vmem:[#allocation2 + $0xa0] sm:$0x3] (!%p119_p7), %vm293_vm0, %v930_v0  ;;  %301 = vst.msk [vmem:[#allocation2 + $0xb8] sm:$0x3] (!%p119_p7), %vm293_vm0, %v930_v0  ;;  %vm217_vm2 = vcmp.lt.s32.totalorder (!%p119_p7), %v202_v1, 16  ;;  %v203_v2 = vadd.s32 (!%p119_p7), 1, %v202_v1 }
  0x11   : > { %302 = vst.msk [vmem:[#allocation2 + $0xd0] sm:$0x3] (!%p119_p7), %vm293_vm0, %v930_v0  ;;  %303 = vst.msk [vmem:[#allocation2 + $0xe8] sm:$0x3] (!%p119_p7), %vm293_vm0, %v930_v0  ;;  %v204_v3 = vadd.s32 (!%p119_p7), 2, %v202_v1  ;;  %v205_v4 = vadd.s32 (!%p119_p7), 3, %v202_v1 }
  0x12   : > { %304 = vst.msk [vmem:[#allocation2 + $0x100] sm:$0x3] (!%p119_p7), %vm293_vm0, %v930_v0  ;;  %305 = vst.msk [vmem:[#allocation2 + $0x118] sm:$0x3] (!%p119_p7), %vm293_vm0, %v930_v0  ;;  %v206_v5 = vadd.s32 (!%p119_p7), 4, %v202_v1  ;;  %v207_v6 = vadd.s32 (!%p119_p7), 5, %v202_v1 }
  0x13   : > { %306 = vst.msk [vmem:[#allocation2 + $0x130] sm:$0x3] %vm293_vm0, %v930_v0  ;;  %307 = vst.msk [vmem:[#allocation2 + $0x148] sm:$0x3] %vm293_vm0, %v930_v0  ;;  %s1201_s17 = smov (!%p152_p8, %s146_s17), 15  ;;  %v208_v7 = vadd.s32 6, %v202_v1 }
  0x14   : > { %308 = vst.msk [vmem:[#allocation2 + $0x160] sm:$0x3] %vm293_vm0, %v930_v0  ;;  %v1003_v8 = vadd.s32 7, %v202_v1  ;;  %vm218_vm3 = vcmp.lt.s32.totalorder %v203_v2, 16  ;;  %vm219_vm4 = vcmp.lt.s32.totalorder %v204_v3, 16  ;;  %vm220_vm5 = vcmp.lt.s32.totalorder %v205_v4, 16 }
  0x15   : > { %v1005_v9 = vadd.s32 8, %v202_v1  ;;  %s713_s20 = sshll.u32 %s1201_s17, 4  ;;  %vm221_vm6 = vcmp.lt.s32.totalorder %v206_v5, 16  ;;  %vm222_vm7 = vcmp.lt.s32.totalorder %v207_v6, 16  ;;  %vm223_vm8 = vcmp.lt.s32.totalorder %v208_v7, 16  ;;  %s1115_s24 = scalar_lea.vmem [#allocation3], %s1001_s19  }
  0x16   : > { %vm224_vm9 = vcmp.lt.s32.totalorder %v1003_v8, 16  ;;  %s1011_s23 = scalar_lea.vmem %s1188_s0, %s713_s20  ;;  %v1014_v10 = vadd.s32 9, %v202_v1  ;;  %v1016_v11 = vadd.s32 10, %v202_v1  ;;  %v1018_v12 = vadd.s32 11, %v202_v1  ;;  %s451_s25 = smul.u32 (%p973_p3), 5, %s888_s8 }
  0x17   : > { %vm225_vm10 = vcmp.lt.s32.totalorder %v1005_v9, 16  ;;  %v171_v13 = vld [vmem:[%s1011_s23] sm:$0xff]  ;;  %v172_v14 = vld [vmem:[%s1011_s23 + $0x8] sm:$0xff]  ;;  %v173_v15 = vld [vmem:[%s1011_s23 + $0x10] sm:$0xff]  ;;  %v1023_v16 = vadd.s32 12, %v202_v1  ;;  %v1025_v17 = vadd.s32 13, %v202_v1 }
  0x18   : > { %v1027_v18 = vadd.s32 14, %v202_v1  ;;  %v232_v19 = vsel %vm217_vm2, %v171_v13, -inf  ;;  %v233_v20 = vsel %vm217_vm2, %v172_v14, -inf  ;;  %v234_v21 = vsel %vm218_vm3, %v173_v15, -inf  ;;  %v174_v22 = vld [vmem:[%s1011_s23 + $0x18] sm:$0xff]  ;;  %v175_v23 = vld [vmem:[%s1011_s23 + $0x20] sm:$0xff] }
  0x19   : > { %v176_v24 = vld [vmem:[%s1011_s23 + $0x28] sm:$0xff]  ;;  %263 = vst.msk [vmem:[#allocation2] sm:$0xff] %vm262_vm1, %v232_v19  ;;  %264 = vst.msk [vmem:[#allocation2 + $0x8] sm:$0xff] %vm262_vm1, %v233_v20  ;;  %v235_v25 = vsel %vm218_vm3, %v174_v22, -inf  ;;  %v236_v26 = vsel %vm219_vm4, %v175_v23, -inf  ;;  %v177_v28 = vld [vmem:[%s1011_s23 + $0x30] sm:$0xff] }
  0x1a   : > { %265 = vst.msk [vmem:[#allocation2 + $0x18] sm:$0xff] %vm262_vm1, %v234_v21  ;;  %v237_v27 = vsel %vm219_vm4, %v176_v24, -inf  ;;  %v178_v29 = vld [vmem:[%s1011_s23 + $0x38] sm:$0xff]  ;;  %v179_v30 = vld [vmem:[%s1011_s23 + $0x40] sm:$0xff]  ;;  %266 = vst.msk [vmem:[#allocation2 + $0x20] sm:$0xff] %vm262_vm1, %v235_v25  ;;  %v238_v31 = vsel %vm220_vm5, %v177_v28, -inf }
  0x1b   : > { %267 = vst.msk [vmem:[#allocation2 + $0x30] sm:$0xff] %vm262_vm1, %v236_v26  ;;  %268 = vst.msk [vmem:[#allocation2 + $0x38] sm:$0xff] %vm262_vm1, %v237_v27  ;;  %v239_v32 = vsel %vm220_vm5, %v178_v29, -inf  ;;  %v240_v33 = vsel %vm221_vm6, %v179_v30, -inf  ;;  %v180_v34 = vld [vmem:[%s1011_s23 + $0x48] sm:$0xff]  ;;  %v181_v35 = vld [vmem:[%s1011_s23 + $0x50] sm:$0xff] }
  0x1c   : > { %v182_v36 = vld [vmem:[%s1011_s23 + $0x58] sm:$0xff]  ;;  %269 = vst.msk [vmem:[#allocation2 + $0x48] sm:$0xff] %vm262_vm1, %v238_v31  ;;  %270 = vst.msk [vmem:[#allocation2 + $0x50] sm:$0xff] %vm262_vm1, %v239_v32  ;;  %v241_v37 = vsel %vm221_vm6, %v180_v34, -inf  ;;  %v242_v38 = vsel %vm222_vm7, %v181_v35, -inf  ;;  %v183_v40 = vld [vmem:[%s1011_s23 + $0x60] sm:$0xff] }
  0x1d   : > { %271 = vst.msk [vmem:[#allocation2 + $0x60] sm:$0xff] %vm262_vm1, %v240_v33  ;;  %v243_v39 = vsel %vm222_vm7, %v182_v36, -inf  ;;  %v184_v41 = vld [vmem:[%s1011_s23 + $0x68] sm:$0xff]  ;;  %v185_v42 = vld [vmem:[%s1011_s23 + $0x70] sm:$0xff]  ;;  %272 = vst.msk [vmem:[#allocation2 + $0x68] sm:$0xff] %vm262_vm1, %v241_v37  ;;  %v244_v43 = vsel %vm223_vm8, %v183_v40, -inf }
  0x1e   : > { %273 = vst.msk [vmem:[#allocation2 + $0x78] sm:$0xff] %vm262_vm1, %v242_v38  ;;  %274 = vst.msk [vmem:[#allocation2 + $0x80] sm:$0xff] %vm262_vm1, %v243_v39  ;;  %v245_v44 = vsel %vm223_vm8, %v184_v41, -inf  ;;  %v246_v45 = vsel %vm224_vm9, %v185_v42, -inf  ;;  %v186_v46 = vld [vmem:[%s1011_s23 + $0x78] sm:$0xff]  ;;  %v187_v47 = vld [vmem:[%s1011_s23 + $0x80] sm:$0xff] }
  0x1f   : > { %v188_v48 = vld [vmem:[%s1011_s23 + $0x88] sm:$0xff]  ;;  %275 = vst.msk [vmem:[#allocation2 + $0x90] sm:$0xff] %vm262_vm1, %v244_v43  ;;  %276 = vst.msk [vmem:[#allocation2 + $0x98] sm:$0xff] %vm262_vm1, %v245_v44  ;;  %v247_v49 = vsel %vm224_vm9, %v186_v46, -inf  ;;  %v248_v50 = vsel %vm225_vm10, %v187_v47, -inf  ;;  %v189_v52 = vld [vmem:[%s1011_s23 + $0x90] sm:$0xff] }
  0x20   : > { %277 = vst.msk [vmem:[#allocation2 + $0xa8] sm:$0xff] %vm262_vm1, %v246_v45  ;;  %v249_v51 = vsel %vm225_vm10, %v188_v48, -inf  ;;  %vm226_vm11 = vcmp.lt.s32.totalorder %v1014_v10, 16  ;;  %v190_v53 = vld [vmem:[%s1011_s23 + $0x98] sm:$0xff]  ;;  %278 = vst.msk [vmem:[#allocation2 + $0xb0] sm:$0xff] %vm262_vm1, %v247_v49  ;;  %v191_v56 = vld [vmem:[%s1011_s23 + $0xa0] sm:$0xff] }
  0x21   : > { %279 = vst.msk [vmem:[#allocation2 + $0xc0] sm:$0xff] %vm262_vm1, %v248_v50  ;;  %280 = vst.msk [vmem:[#allocation2 + $0xc8] sm:$0xff] %vm262_vm1, %v249_v51  ;;  %v250_v54 = vsel %vm226_vm11, %v189_v52, -inf  ;;  %v251_v55 = vsel %vm226_vm11, %v190_v53, -inf  ;;  %vm227_vm12 = vcmp.lt.s32.totalorder %v1016_v11, 16  ;;  %v192_v57 = vld [vmem:[%s1011_s23 + $0xa8] sm:$0xff] }
  0x22   : > { %v193_v58 = vld [vmem:[%s1011_s23 + $0xb0] sm:$0xff]  ;;  %281 = vst.msk [vmem:[#allocation2 + $0xd8] sm:$0xff] %vm262_vm1, %v250_v54  ;;  %282 = vst.msk [vmem:[#allocation2 + $0xe0] sm:$0xff] %vm262_vm1, %v251_v55  ;;  %v252_v59 = vsel %vm227_vm12, %v191_v56, -inf  ;;  %v253_v60 = vsel %vm227_vm12, %v192_v57, -inf  ;;  %vm228_vm13 = vcmp.lt.s32.totalorder %v1018_v12, 16 }
  0x23   : > { %v194_v61 = vld [vmem:[%s1011_s23 + $0xb8] sm:$0xff]  ;;  %v195_v62 = vld [vmem:[%s1011_s23 + $0xc0] sm:$0xff]  ;;  %vm229_vm14 = vcmp.lt.s32.totalorder %v1023_v16, 16  ;;  %283 = vst.msk [vmem:[#allocation2 + $0xf0] sm:$0xff] %vm262_vm1, %v252_v59  ;;  %284 = vst.msk [vmem:[#allocation2 + $0xf8] sm:$0xff] %vm262_vm1, %v253_v60  ;;  %v254_v63 = vsel %vm228_vm13, %v193_v58, -inf }
  0x24   : > { %v255_v0 = vsel %vm228_vm13, %v194_v61, -inf  ;;  %v256_v1 = vsel %vm229_vm14, %v195_v62, -inf  ;;  %v196_v2 = vld [vmem:[%s1011_s23 + $0xc8] sm:$0xff]  ;;  %v197_v3 = vld [vmem:[%s1011_s23 + $0xd0] sm:$0xff]  ;;  %vm230_vm15 = vcmp.lt.s32.totalorder %v1025_v17, 16  ;;  %285 = vst.msk [vmem:[#allocation2 + $0x108] sm:$0xff] %vm262_vm1, %v254_v63 }
  0x25   : > { %286 = vst.msk [vmem:[#allocation2 + $0x110] sm:$0xff] %vm262_vm1, %v255_v0  ;;  %287 = vst.msk [vmem:[#allocation2 + $0x120] sm:$0xff] %vm262_vm1, %v256_v1  ;;  %v257_v4 = vsel %vm229_vm14, %v196_v2, -inf  ;;  %v258_v5 = vsel %vm230_vm15, %v197_v3, -inf  ;;  %v198_v6 = vld [vmem:[%s1011_s23 + $0xd8] sm:$0xff]  ;;  %v199_v7 = vld [vmem:[%s1011_s23 + $0xe0] sm:$0xff] }
  0x26   : > { %vm231_vm0 = vcmp.lt.s32.totalorder %v1027_v18, 16  ;;  %v200_v8 = vld [vmem:[%s1011_s23 + $0xe8] sm:$0xff]  ;;  %288 = vst.msk [vmem:[#allocation2 + $0x128] sm:$0xff] %vm262_vm1, %v257_v4  ;;  %289 = vst.msk [vmem:[#allocation2 + $0x138] sm:$0xff] %vm262_vm1, %v258_v5  ;;  %v259_v9 = vsel %vm230_vm15, %v198_v6, -inf  ;;  %vm438_vm2 = vcmask 62464  }
  0x27   : > { %v260_v10 = vsel %vm231_vm0, %v199_v7, -inf  ;;  %v261_v11 = vsel %vm231_vm0, %v200_v8, -inf  ;;  %v309_v12 = vld [vmem:[#allocation2] ss:$3 sm:$0x3f]  ;;  %290 = vst.msk [vmem:[#allocation2 + $0x140] sm:$0xff] %vm262_vm1, %v259_v9 }
  0x28   : > { %291 = vst.msk [vmem:[#allocation2 + $0x150] sm:$0xff] %vm262_vm1, %v260_v10  ;;  %292 = vst.msk [vmem:[#allocation2 + $0x158] sm:$0xff] %vm262_vm1, %v261_v11  ;;  %v311_v13 = vld [vmem:[#allocation2 + $0x18] ss:$3 sm:$0x3f]  ;;  %s714_s26 = smul.u32 (%p973_p3), 40, %s888_s8 }
  0x29   : > { %v313_v14 = vld [vmem:[#allocation2 + $0x30] ss:$3 sm:$0x3f]  ;;  %v343_v17 = vld [vmem:[#allocation2 + $0x31] ss:$3 sm:$0x3f] }
  0x2a   : > { %v339_v15 = vld [vmem:[#allocation2 + $0x1] ss:$3 sm:$0x3f]  ;;  %v341_v16 = vld [vmem:[#allocation2 + $0x19] ss:$3 sm:$0x3f]  ;;  %v370_v21 = vmax.f32 %v313_v14, %v343_v17  ;;  %s1134_s30 = scalar_lea.vmem (%p973_p3), %s1189_s1, %s714_s26  }
  0x2b   : > { %v368_v18 = vmax.f32 %v309_v12, %v339_v15  ;;  %v369_v19 = vmax.f32 %v311_v13, %v341_v16  ;;  %v384_v20 = vld [vmem:[#allocation2 + $0x2] ss:$3 sm:$0x3f]  ;;  %v386_v22 = vld [vmem:[#allocation2 + $0x1a] ss:$3 sm:$0x3f] }
  0x2c   : > { %v388_v23 = vld [vmem:[#allocation2 + $0x32] ss:$3 sm:$0x3f]  ;;  %v315_v26 = vld [vmem:[#allocation2 + $0x48] ss:$3 sm:$0x3f] }
  0x2d   : > { %v413_v24 = vmax.f32 %v368_v18, %v384_v20  ;;  %v414_v25 = vmax.f32 %v369_v19, %v386_v22  ;;  %v317_v27 = vld [vmem:[#allocation2 + $0x60] ss:$3 sm:$0x3f]  ;;  %v319_v28 = vld [vmem:[#allocation2 + $0x78] ss:$3 sm:$0x3f]  ;;  %v415_v30 = vmax.f32 %v370_v21, %v388_v23 }
  0x2e   : > { %v345_v29 = vld [vmem:[#allocation2 + $0x49] ss:$3 sm:$0x3f]  ;;  %v347_v32 = vld [vmem:[#allocation2 + $0x61] ss:$3 sm:$0x3f] }
  0x2f   : > { %v428_v31 = vmax.f32 %v413_v24, %v414_v25  ;;  %v349_v33 = vld [vmem:[#allocation2 + $0x79] ss:$3 sm:$0x3f]  ;;  %v371_v34 = vmax.f32 %v315_v26, %v345_v29  ;;  %v372_v35 = vmax.f32 %v317_v27, %v347_v32  ;;  %v394_v40 = vld [vmem:[#allocation2 + $0x7a] ss:$3 sm:$0x3f] }
  0x30   : > { %v373_v36 = vmax.f32 %v319_v28, %v349_v33  ;;  %v390_v37 = vld [vmem:[#allocation2 + $0x4a] ss:$3 sm:$0x3f]  ;;  %v392_v38 = vld [vmem:[#allocation2 + $0x62] ss:$3 sm:$0x3f] }
  0x31   : > { %v433_v39 = vmax.f32 %v428_v31, %v415_v30  ;;  %v416_v41 = vmax.f32 %v371_v34, %v390_v37  ;;  %v321_v42 = vld [vmem:[#allocation2 + $0x90] ss:$3 sm:$0x3f]  ;;  %v417_v43 = vmax.f32 %v372_v35, %v392_v38  ;;  %v323_v44 = vld [vmem:[#allocation2 + $0xa8] ss:$3 sm:$0x3f] }
  0x32   : > { %v325_v45 = vld [vmem:[#allocation2 + $0xc0] ss:$3 sm:$0x3f]  ;;  %v418_v48 = vmax.f32 %v373_v36, %v394_v40  ;;  %v355_v50 = vld [vmem:[#allocation2 + $0xc1] ss:$3 sm:$0x3f] }
  0x33   : > { %439 = vst.msk [vmem:[%s1115_s24] sm:$0x3f] %vm438_vm2, %v433_v39  ;;  %v351_v46 = vld [vmem:[#allocation2 + $0x91] ss:$3 sm:$0x3f]  ;;  %v429_v49 = vmax.f32 %v416_v41, %v417_v43  ;;  %v376_v54 = vmax.f32 %v325_v45, %v355_v50  ;;  %s452_s27 = ssub.s32 (%p973_p3), 6, %s451_s25 }
  0x34   : > { %v353_v47 = vld [vmem:[#allocation2 + $0xa9] ss:$3 sm:$0x3f]  ;;  %v374_v51 = vmax.f32 %v321_v42, %v351_v46  ;;  %v398_v55 = vld [vmem:[#allocation2 + $0xaa] ss:$3 sm:$0x3f] }
  0x35   : > { %v375_v52 = vmax.f32 %v323_v44, %v353_v47  ;;  %v396_v53 = vld [vmem:[#allocation2 + $0x92] ss:$3 sm:$0x3f]  ;;  %v400_v56 = vld [vmem:[#allocation2 + $0xc2] ss:$3 sm:$0x3f]  ;;  %v434_v57 = vmax.f32 %v429_v49, %v418_v48 }
  0x36   : > { %v419_v58 = vmax.f32 %v374_v51, %v396_v53  ;;  %v327_v60 = vld [vmem:[#allocation2 + $0xd8] ss:$3 sm:$0x3f]  ;;  %v329_v61 = vld [vmem:[#allocation2 + $0xf0] ss:$3 sm:$0x3f]  ;;  %v421_v0 = vmax.f32 %v376_v54, %v400_v56 }
  0x37   : > { %v420_v59 = vmax.f32 %v375_v52, %v398_v55  ;;  %v331_v62 = vld [vmem:[#allocation2 + $0x108] ss:$3 sm:$0x3f]  ;;  %440 = vst.msk [vmem:[%s1115_s24 + $0x8] sm:$0x3f] %vm438_vm2, %v434_v57  ;;  %p453_p9 = scmp.lt.s32.totalorder (%p973_p3), %s452_s27, 5 }
  0x38   : > { %v357_v63 = vld [vmem:[#allocation2 + $0xd9] ss:$3 sm:$0x3f]  ;;  %v359_v2 = vld [vmem:[#allocation2 + $0xf1] ss:$3 sm:$0x3f] }
  0x39   : > { %v430_v1 = vmax.f32 %v419_v58, %v420_v59  ;;  %v361_v3 = vld [vmem:[#allocation2 + $0x109] ss:$3 sm:$0x3f]  ;;  %v377_v4 = vmax.f32 %v327_v60, %v357_v63  ;;  %v378_v5 = vmax.f32 %v329_v61, %v359_v2  ;;  %v406_v10 = vld [vmem:[#allocation2 + $0x10a] ss:$3 sm:$0x3f] }
  0x3a   : > { %v379_v6 = vmax.f32 %v331_v62, %v361_v3  ;;  %v402_v7 = vld [vmem:[#allocation2 + $0xda] ss:$3 sm:$0x3f]  ;;  %v404_v8 = vld [vmem:[#allocation2 + $0xf2] ss:$3 sm:$0x3f] }
  0x3b   : > { %v435_v9 = vmax.f32 %v430_v1, %v421_v0  ;;  %v422_v11 = vmax.f32 %v377_v4, %v402_v7  ;;  %v333_v12 = vld [vmem:[#allocation2 + $0x120] ss:$3 sm:$0x3f]  ;;  %v423_v13 = vmax.f32 %v378_v5, %v404_v8  ;;  %v335_v14 = vld [vmem:[#allocation2 + $0x138] ss:$3 sm:$0x3f] }
  0x3c   : > { %v337_v15 = vld [vmem:[#allocation2 + $0x150] ss:$3 sm:$0x3f]  ;;  %v424_v18 = vmax.f32 %v379_v6, %v406_v10  ;;  %v367_v20 = vld [vmem:[#allocation2 + $0x151] ss:$3 sm:$0x3f] }
  0x3d   : > { %441 = vst.msk [vmem:[%s1115_s24 + $0x10] sm:$0x3f] %vm438_vm2, %v435_v9  ;;  %v363_v16 = vld [vmem:[#allocation2 + $0x121] ss:$3 sm:$0x3f]  ;;  %v431_v19 = vmax.f32 %v422_v11, %v423_v13  ;;  %v382_v24 = vmax.f32 %v337_v15, %v367_v20 }
  0x3e   : > { %v365_v17 = vld [vmem:[#allocation2 + $0x139] ss:$3 sm:$0x3f]  ;;  %v380_v21 = vmax.f32 %v333_v12, %v363_v16  ;;  %v410_v25 = vld [vmem:[#allocation2 + $0x13a] ss:$3 sm:$0x3f] }
  0x3f   : > { %v381_v22 = vmax.f32 %v335_v14, %v365_v17  ;;  %v408_v23 = vld [vmem:[#allocation2 + $0x122] ss:$3 sm:$0x3f]  ;;  %v412_v26 = vld [vmem:[#allocation2 + $0x152] ss:$3 sm:$0x3f]  ;;  %v436_v27 = vmax.f32 %v431_v19, %v424_v18 }
  0x40   : > { %v425_v28 = vmax.f32 %v380_v21, %v408_v23  ;;  %v427_v30 = vmax.f32 %v382_v24, %v412_v26 }
  0x41   : > { %v426_v29 = vmax.f32 %v381_v22, %v410_v25  ;;  %442 = vst.msk [vmem:[%s1115_s24 + $0x18] sm:$0x3f] %vm438_vm2, %v436_v27  ;;  %450 = sbr.rel (!%p973_p3) target bundleno = 133 (0x85), region = 28 }
  0x43   : > { %v432_v31 = vmax.f32 %v425_v28, %v426_v29 }
  0x45   : > { %v437_v32 = vmax.f32 %v432_v31, %v427_v30 }
  0x47   : > { %443 = vst.msk [vmem:[%s1115_s24 + $0x20] sm:$0x3f] %vm438_vm2, %v437_v32 }
  0x48   : > { %s1203_s27 = smov (!%p453_p9, %s452_s27), 5 }
  0x49   : > { %s701_s2 = sshll.u32 %s1203_s27, 7 }
  0x4a   : > { %p704_p10 = scmp.eq.s32.totalorder %s701_s2, 0 }
  0x4b   : > { %822 = sdivrem.u32 (!%p704_p10), %s1203_s27, 5 }
  0x4c   : > { %462 = sbr.rel (%p704_p10) target bundleno = 133 (0x85), region = 32 }
  0x54   : > { %s1140_s3 = spop.drf %822 }
  0x55   : > { %p705_p11 = scmp.le.s32.totalorder %s1140_s3, 0 }
  0x56   : > { %s1191_s4 = smov (!%p705_p11), %s1134_s30  ;;  %s1192_s5 = smov (!%p705_p11), %s1115_s24 }
  0x57   : > { %642 = sbr.rel (%p705_p11) target bundleno = 104 (0x68), region = 152  ;;  %s1149_s6 = smov (!%p705_p11), 0  }
  0x58   : > { %s1151_s8 = smov (!%p705_p11), 0  }
  0x5e LB: >> { %v534_v33 = vld [vmem:[%s904_s5] sm:$0xff]  ;;  %v536_v34 = vld [vmem:[%s904_s5 + $0x8] sm:$0xff]  ;;  %v538_v35 = vld [vmem:[%s904_s5 + $0x10] sm:$0xff]  ;;  %s544_s11 = sadd.s32 1, %s908_s6  ;;  %s528_s8 = sadd.s32 1, %s912_s8   ;;  %s912_s8 = sphi %s1151_s8, %s528_s8   ;;  %s908_s6 = sphi %s1149_s6, %s1193_s6   ;;  %s904_s5 = sphi %s1192_s5, %s549_s5   ;;  %s900_s4 = sphi %s1191_s4, %s550_s4  }
  0x5f   : >> { %535 = vst [vmem:[%s900_s4] sm:$0xff] %v534_v33  ;;  %537 = vst [vmem:[%s900_s4 + $0x8] sm:$0xff] %v536_v34  ;;  %v540_v36 = vld [vmem:[%s904_s5 + $0x18] sm:$0xff]  ;;  %v542_v37 = vld [vmem:[%s904_s5 + $0x20] sm:$0xff]  ;;  %p545_p12 = scmp.ge.s32.totalorder %s544_s11, %s1140_s3  ;;  %p527_p13 = scmp.ge.s32.totalorder %s528_s8, %s1140_s3 }
  0x60   : >> { %539 = vst [vmem:[%s900_s4 + $0x10] sm:$0xff] %v538_v35  ;;  %541 = vst [vmem:[%s900_s4 + $0x18] sm:$0xff] %v540_v36 }
  0x61   : >> { %543 = vst [vmem:[%s900_s4 + $0x20] sm:$0xff] %v542_v37  ;;  %s1205_s11 = smov (%p545_p12, %s544_s11), 0  ;;  %530 = sbr.rel (!%p527_p13) target bundleno = 94 (0x5e), region = 158 }
  0x62   : >> { %s547_s13 = smul.u32 40, %s1205_s11  ;;  %s1193_s6 = smov %s1205_s11 }
  0x64   : >> { %s549_s5 = scalar_lea.vmem %s1115_s24, %s547_s13 [#allocation3]   ;;  %s550_s4 = scalar_lea.vmem %s1134_s30, %s547_s13  }
  0x68 PF: > { %824 = sdivrem.u32 %s1203_s27, 5 }
  0x69   : > { %s706_s14 = smul.u32 40, %s1140_s3 }
  0x6b   : > { %s555_s15 = scalar_lea.vmem %s1115_s24, %s706_s14 [#allocation3]   ;;  %s557_s17 = scalar_lea.vmem %s1134_s30, %s706_s14  }
  0x71   : > { %s825_s18 = spop.drf %824 }
  0x72   : > { %p708_p0 = scmp.le.s32.totalorder %s825_s18, 0 }
  0x73   : > { %s914_s19 = smov (!%p708_p0), %s557_s17   ;;  %s918_s20 = smov (!%p708_p0), %s555_s15  }
  0x74   : > { %656 = sbr.rel (%p708_p0) target bundleno = 133 (0x85), region = 163  ;;  %s922_s21 = smov (!%p708_p0), 0  }
  0x75   : > { %s926_s22 = smov (!%p708_p0), 0  }
  0x7b LB: >> { %v567_v38 = vld [vmem:[%s920_s20] sm:$0xff]  ;;  %s569_s23 = sadd.s32 1, %s924_s21  ;;  %s561_s22 = sadd.s32 1, %s928_s22   ;;  %s928_s22 = sphi %s926_s22, %s561_s22   ;;  %s924_s21 = sphi %s922_s21, %s923_s21   ;;  %s920_s20 = sphi %s918_s20, %s574_s20   ;;  %s916_s19 = sphi %s914_s19, %s575_s19  }
  0x7c   : >> { %568 = vst [vmem:[%s916_s19] sm:$0xff] %v567_v38  ;;  %p570_p1 = scmp.ge.s32.totalorder %s569_s23, %s825_s18  ;;  %p560_p2 = scmp.ge.s32.totalorder %s561_s22, %s825_s18 }
  0x7e   : >> { %s1207_s23 = smov (%p570_p1, %s569_s23), 0  ;;  %563 = sbr.rel (!%p560_p2) target bundleno = 123 (0x7b), region = 169 }
  0x7f   : >> { %s709_s24 = sshll.u32 %s1207_s23, 3  ;;  %s923_s21 = smov %s1207_s23  }
  0x80   : >> { %s574_s20 = scalar_lea.vmem %s555_s15, %s709_s24 [#allocation3]   ;;  %s575_s19 = scalar_lea.vmem %s557_s17, %s709_s24  }
  0x85 PF: > { %s11_s10 = sadd.s32 1, %s896_s10   ;;  %s1194_s6 = smov %s884_s7 }
  0x86   : > { %p8_p3 = scmp.ge.s32.totalorder %s11_s10, 4   ;;  %s1195_s7 = smov %s982_s16 }
  0x87   : > { %s1196_s8 = smov %s892_s9  ;;  %s1197_s9 = smov %s1199_s12 }
  0x88   :  { %10 = sbr.rel (!%p8_p3) target bundleno = 3 (0x3), region = 180 }

</bundles_post_ra>
